<compile_context>
chip_gen: v7x
topology: tpu7x:2x2x1
jax: 0.10.0
libtpu: 0.0.40
codegen_flags: <defaults>
</compile_context>

<pallas_src>
import functools

import jax
import jax.numpy as jnp
from jax import lax
from jax.experimental import pallas as pl
from jax.experimental.pallas import tpu as pltpu

SELU_ALPHA = 1.6732632423543772
SELU_SCALE = 1.0507009873554805


def _selu(x):
    # f32 elementwise; exp goes to the EUP slot, select to the VPU.
    return SELU_SCALE * jnp.where(x > 0, x, SELU_ALPHA * (jnp.exp(x) - 1.0))


def _resnet_kernel(x_ref, w_ref, o_ref, act_ref, *, seq_len):
    """One grid step = (batch block b, layer l).

    x_ref:   (C, NB)      lane-flattened activations for this batch block (NB = b_blk * L)
    w_ref:   (2, C, 3C)   this layer's two tap-fused conv weights (matmul dtype)
    o_ref:   (C, NB)      output block (written only on the last layer)
    act_ref: (C, NB) f32  VMEM scratch carrying the activation across the layer axis
    """
    l = pl.program_id(1)
    n_layers = pl.num_programs(1)

    @pl.when(l == 0)
    def _():
        act_ref[...] = x_ref[...].astype(jnp.float32)

    x = act_ref[...]                      # (C, NB) f32
    _, nb = x.shape

    # Per-sequence boundary masks (batch elements are packed contiguously along lanes,
    # seq_len lanes each).  Computed once per grid step; reused by both convs.
    lane = lax.broadcasted_iota(jnp.int32, (1, nb), 1)
    pos = lane % seq_len
    not_first = pos != 0                  # zero x[l-1] at the left edge of each sequence
    not_last = pos != (seq_len - 1)       # zero x[l+1] at the right edge of each sequence

    mm_dtype = w_ref.dtype

    def stacked_taps(h):
        # Build (3C, NB) = [h shifted right; h; h shifted left] via XLU rolls + VPU masks.
        h_prev = jnp.where(not_first, pltpu.roll(h, shift=1, axis=1), 0.0)
        h_next = jnp.where(not_last, pltpu.roll(h, shift=nb - 1, axis=1), 0.0)
        return jnp.concatenate([h_prev, h, h_next], axis=0).astype(mm_dtype)

    def conv(h, w):
        # One fused MXU matmul per conv: (C, 3C) @ (3C, NB) -> (C, NB), f32 accumulate.
        return jnp.dot(w, stacked_taps(h), preferred_element_type=jnp.float32)

    h = _selu(conv(x, w_ref[0]))
    y = conv(h, w_ref[1])
    x_new = _selu(y + x)                  # residual add + SELU in f32
    act_ref[...] = x_new

    @pl.when(l == n_layers - 1)
    def _():
        o_ref[...] = x_new.astype(o_ref.dtype)


def _pick_batch_block(B, L):
    """Pick how many batch elements to pack per grid block.

    Prefer lane widths that are multiples of 128 (unmasked stores, full MXU N) while
    keeping >= 2 blocks when possible so both v7x TensorCores get work.  Falls back to
    the full batch (full-array lane dim is always a legal block).
    """
    target_lanes = 512
    good = [d for d in range(1, B) if B % d == 0 and (d * L) % 128 == 0]
    if good:
        wide = [d for d in good if d * L >= 128]
        pool = wide or good
        return min(pool, key=lambda d: abs(d * L - target_lanes))
    return B


def resnet_pallas(x, w_fused, num_layers, *, batch_block=None,
                  matmul_dtype=jnp.float32):
    """x: (B, C, L) float32; w_fused: (num_layers*2, C, 3C) tap-fused conv weights.

    matmul_dtype=jnp.float32 (default) is bit-faithful to the PyTorch module;
    matmul_dtype=jnp.bfloat16 is the MXU fast path (f32 accumulation) with bf16-level error.
    """
    B, C, L = x.shape
    assert w_fused.shape == (num_layers * 2, C, 3 * C), w_fused.shape

    if batch_block is None:
        batch_block = _pick_batch_block(B, L)
    assert B % batch_block == 0
    NB = batch_block * L
    n_blocks = B // batch_block

    # Layout plumbing in the wrapper: lane-flatten batch*length so the kernel sees a
    # lane-dense (C, NB) slab per block.
    x_lanes = jnp.reshape(jnp.transpose(x, (1, 0, 2)), (C, B * L))
    w_cast = w_fused.astype(matmul_dtype)   # single cast point for matmul operands

    kernel = functools.partial(_resnet_kernel, seq_len=L)
    out_lanes = pl.pallas_call(
        kernel,
        out_shape=jax.ShapeDtypeStruct((C, B * L), x.dtype),
        grid=(n_blocks, num_layers),
        in_specs=[
            # Activation block: constant across the layer axis -> fetched once per b.
            pl.BlockSpec((C, NB), lambda b, l: (0, b)),
            # Per-layer weights: only one layer (double-buffered) resident in VMEM.
            pl.BlockSpec((2, C, 3 * C), lambda b, l: (l, 0, 0)),
        ],
        out_specs=pl.BlockSpec((C, NB), lambda b, l: (0, b)),
        scratch_shapes=[pltpu.VMEM((C, NB), jnp.float32)],
        compiler_params=pltpu.CompilerParams(
            dimension_semantics=("parallel", "arbitrary")),
    )(x_lanes, w_cast)

    return jnp.transpose(jnp.reshape(out_lanes, (C, B, L)), (1, 0, 2))


def resnet_apply(x, w_fused, size, num_layers, **kwargs):
    """Mirrors ResNet.forward: accepts (B, size, L) or flattened (B, size*L)."""
    should_view = x.ndim == 2
    if should_view:
        x = x.reshape(x.shape[0], size, -1)
    out = resnet_pallas(x, w_fused, num_layers, **kwargs)
    return out.reshape(out.shape[0], -1) if should_view else out


def init_params(key, size, num_layers, transpose=False):
    """Deterministic synthetic weight_norm parameters, returned tap-fused:
    shape (num_layers*2, size, 3*size); columns [0:C|C:2C|2C:3C] are taps for
    x[l-1], x[l], x[l+1]."""
    kv, kg = jax.random.split(key)
    # Non-transpose: Conv1d weight (out, in, 3), weight_norm dim=0.
    # Transpose:     ConvTranspose1d weight (in, out, 3), weight_norm dim=0.
    v = 0.2 * jax.random.normal(kv, (num_layers, 2, size, size, 3), jnp.float32)
    g = jnp.abs(jax.random.normal(kg, (num_layers, 2, size), jnp.float32)) + 0.5
    norm = jnp.sqrt(jnp.sum(v * v, axis=(3, 4), keepdims=True))
    w = g[..., None, None] * v / norm        # weight_norm along dim 0 of the conv weight
    if transpose:
        # ConvTranspose1d(k=3, s=1, p=1) == Conv1d with swapped io channels and flipped taps.
        # TODO(synk): transpose=True path is setup-level glue only; not exercised below.
        w = jnp.flip(jnp.swapaxes(w, 2, 3), axis=-1)
    # (NL, 2, out, in, k) -> (NL, 2, out, k, in) -> (NL*2, out, 3*in): tap-fused weights.
    w_fused = jnp.transpose(w, (0, 1, 2, 4, 3)).reshape(num_layers * 2, size, 3 * size)
    return w_fused


def resnet_reference(x, w_fused, num_layers):
    """Pure-JAX reference (same math, no Pallas) for correctness checking."""
    C = x.shape[1]

    def conv(h, w):  # w: (C, 3C) tap-fused
        hp = jnp.pad(h, ((0, 0), (0, 0), (1, 1)))
        w0, w1, w2 = w[:, :C], w[:, C:2 * C], w[:, 2 * C:]
        return (jnp.einsum("oc,bcl->bol", w0, hp[:, :, :-2])
                + jnp.einsum("oc,bcl->bol", w1, hp[:, :, 1:-1])
                + jnp.einsum("oc,bcl->bol", w2, hp[:, :, 2:]))

    for layer in range(num_layers):
        h = jax.nn.selu(conv(x, w_fused[2 * layer]))
        h = conv(h, w_fused[2 * layer + 1])
        x = jax.nn.selu(h + x)
    return x


if __name__ == "__main__":
    B, size, L, num_layers = 2, 8, 64, 3   # small demo; B*L = 128 lanes (lane-dense)

    key = jax.random.PRNGKey(0)
    kx, kp = jax.random.split(key)
    x = jax.random.normal(kx, (B, size, L), jnp.float32)
    w_fused = init_params(kp, size, num_layers, transpose=False)

    ref = resnet_reference(x, w_fused, num_layers)

    # Default path: f32 matmul operands -> bit-faithful to the PyTorch (f32) module.
    out = resnet_apply(x, w_fused, size, num_layers)
    jax.block_until_ready(out)
    assert out.shape == (B, size, L), out.shape
    assert jnp.allclose(out, ref, atol=1e-4, rtol=1e-4), \
        float(jnp.max(jnp.abs(out - ref)))

    # Optional bf16 MXU fast path: validate with a bf16-appropriate relative-norm bound
    # (element-wise allclose is not meaningful at bf16 precision over stacked layers).
    out_bf16 = resnet_apply(x, w_fused, size, num_layers, matmul_dtype=jnp.bfloat16)
    jax.block_until_ready(out_bf16)
    assert out_bf16.shape == (B, size, L), out_bf16.shape
    assert bool(jnp.all(jnp.isfinite(out_bf16)))
    rel_err = float(jnp.linalg.norm(out_bf16 - ref) / jnp.linalg.norm(ref))
    assert rel_err < 0.2, rel_err

    print("KERNEL_OK")
</pallas_src>

<mosaic_0001>
module attributes {stable_mosaic.version = 11 : i64} {
  func.func @_resnet_kernel(%arg0: i32, %arg1: i32, %arg2: memref<8x128xf32, #tpu.memory_space<vmem>>, %arg3: memref<2x8x24xf32, #tpu.memory_space<vmem>>, %arg4: memref<8x128xf32, #tpu.memory_space<vmem>>, %arg5: memref<8x128xf32, #tpu.memory_space<vmem>>) attributes {dimension_semantics = [#tpu.dimension_semantics<parallel>, #tpu.dimension_semantics<arbitrary>], iteration_bounds = array<i64: 1, 3>, scalar_prefetch = 0 : i64, scratch_operands = 1 : i64, tpu.core_type = #tpu.core_type<tc>, window_params = [{transform_indices = @transform_0, window_bounds = array<i64: 8, 128>}, {transform_indices = @transform_1, window_bounds = array<i64: 2, 8, 24>}, {transform_indices = @transform_2, window_bounds = array<i64: 8, 128>}]} {
    %c0_i32 = arith.constant 0 : i32
    %0 = arith.cmpi eq, %arg1, %c0_i32 : i32
    %1 = arith.extui %0 : i1 to i32
    %c0_i32_0 = arith.constant 0 : i32
    %2 = arith.cmpi ne, %1, %c0_i32_0 : i32
    scf.if %2 {
      %c0_31 = arith.constant 0 : index
      %c0_32 = arith.constant 0 : index
      %78 = vector.load %arg2[%c0_31, %c0_32] : memref<8x128xf32, #tpu.memory_space<vmem>>, vector<8x128xf32>
      %c0_33 = arith.constant 0 : index
      %c0_34 = arith.constant 0 : index
      %79 = vector.load %arg5[%c0_33, %c0_34] : memref<8x128xf32, #tpu.memory_space<vmem>>, vector<8x128xf32>
      tpu.vector_store %arg5[%c0_33, %c0_34], %78 {strides = array<i32>} : memref<8x128xf32, #tpu.memory_space<vmem>>, vector<8x128xf32>,
    } else {
    }
    %c0 = arith.constant 0 : index
    %c0_1 = arith.constant 0 : index
    %3 = vector.load %arg5[%c0, %c0_1] : memref<8x128xf32, #tpu.memory_space<vmem>>, vector<8x128xf32>
    %4 = tpu.iota {dimensions = array<i32: 1>} : vector<1x128xi32>
    %c64_i32 = arith.constant 64 : i32
    %c0_i32_2 = arith.constant 0 : i32
    %5 = arith.cmpi eq, %c64_i32, %c0_i32_2 : i32
    %c1_i32 = arith.constant 1 : i32
    %6 = arith.select %5, %c1_i32, %c64_i32 : i32
    %7 = vector.broadcast %6 : i32 to vector<1x128xi32>
    %8 = arith.remsi %4, %7 : vector<1x128xi32>
    %c0_i32_3 = arith.constant 0 : i32
    %9 = vector.broadcast %c0_i32_3 : i32 to vector<1x128xi32>
    %10 = arith.cmpi ne, %8, %9 : vector<1x128xi32>
    %c0_i32_4 = arith.constant 0 : i32
    %11 = vector.broadcast %c0_i32_4 : i32 to vector<1x128xi32>
    %12 = arith.cmpi slt, %8, %11 : vector<1x128xi32>
    %c0_i32_5 = arith.constant 0 : i32
    %13 = arith.cmpi slt, %6, %c0_i32_5 : i32
    %14 = vector.broadcast %13 : i1 to vector<1x128xi1>
    %15 = vector.broadcast %14 : vector<1x128xi1> to vector<1x128xi1>
    %16 = arith.xori %12, %15 : vector<1x128xi1>
    %17 = arith.andi %16, %10 : vector<1x128xi1>
    %18 = vector.broadcast %6 : i32 to vector<1x128xi32>
    %19 = arith.addi %8, %18 : vector<1x128xi32>
    %20 = arith.select %17, %19, %8 : vector<1x128xi1>, vector<1x128xi32>
    %c0_i32_6 = arith.constant 0 : i32
    %21 = vector.broadcast %c0_i32_6 : i32 to vector<1x128xi32>
    %22 = arith.cmpi ne, %20, %21 : vector<1x128xi32>
    %c63_i32 = arith.constant 63 : i32
    %23 = vector.broadcast %c63_i32 : i32 to vector<1x128xi32>
    %24 = arith.cmpi ne, %20, %23 : vector<1x128xi32>
    %c0_7 = arith.constant 0 : index
    %c0_8 = arith.constant 0 : index
    %c0_9 = arith.constant 0 : index
    %25 = vector.load %arg3[%c0_7, %c0_8, %c0_9] : memref<2x8x24xf32, #tpu.memory_space<vmem>>, vector<1x8x24xf32>
    %26 = vector.shape_cast %25 : vector<1x8x24xf32> to vector<8x24xf32>
    %c1_i32_10 = arith.constant 1 : i32
    %27 = tpu.dynamic_rotate %3 by %c1_i32_10 dim 1 : vector<8x128xf32>, i32 -> vector<8x128xf32>
    %cst = arith.constant 0.000000e+00 : f32
    %28 = vector.shape_cast %22 : vector<1x128xi1> to vector<1x128xi1>
    %29 = vector.broadcast %28 : vector<1x128xi1> to vector<8x128xi1>
    %30 = vector.broadcast %cst : f32 to vector<8x128xf32>
    %31 = arith.select %29, %27, %30 : vector<8x128xi1>, vector<8x128xf32>
    %c127_i32 = arith.constant 127 : i32
    %32 = tpu.dynamic_rotate %3 by %c127_i32 dim 1 : vector<8x128xf32>, i32 -> vector<8x128xf32>
    %cst_11 = arith.constant 0.000000e+00 : f32
    %33 = vector.shape_cast %24 : vector<1x128xi1> to vector<1x128xi1>
    %34 = vector.broadcast %33 : vector<1x128xi1> to vector<8x128xi1>
    %35 = vector.broadcast %cst_11 : f32 to vector<8x128xf32>
    %36 = arith.select %34, %32, %35 : vector<8x128xi1>, vector<8x128xf32>
    %37 = tpu.concatenate %31, %3, %36 in 0 : vector<8x128xf32>, vector<8x128xf32>, vector<8x128xf32> -> vector<24x128xf32>
    %cst_12 = arith.constant dense<0.000000e+00> : vector<8x128xf32>
    %38 = tpu.matmul %26, %37, %cst_12 {dimension_numbers = #tpu.dot_dimension_numbers<[1], [0], [0], [1], [0, 0, 1, 1], [], []>} : vector<8x24xf32>, vector<24x128xf32>, vector<8x128xf32> -> vector<8x128xf32>
    %cst_13 = arith.constant 0.000000e+00 : f32
    %39 = vector.broadcast %cst_13 : f32 to vector<8x128xf32>
    %40 = arith.cmpf ogt, %38, %39 : vector<8x128xf32>
    %41 = math.exp %38 : vector<8x128xf32>
    %cst_14 = arith.constant 1.000000e+00 : f32
    %42 = vector.broadcast %cst_14 : f32 to vector<8x128xf32>
    %43 = arith.subf %41, %42 : vector<8x128xf32>
    %cst_15 = arith.constant 1.67326319 : f32
    %44 = vector.broadcast %cst_15 : f32 to vector<8x128xf32>
    %45 = arith.mulf %44, %43 : vector<8x128xf32>
    %46 = arith.select %40, %38, %45 : vector<8x128xi1>, vector<8x128xf32>
    %cst_16 = arith.constant 1.05070102 : f32
    %47 = vector.broadcast %cst_16 : f32 to vector<8x128xf32>
    %48 = arith.mulf %47, %46 : vector<8x128xf32>
    %c1 = arith.constant 1 : index
    %c0_17 = arith.constant 0 : index
    %c0_18 = arith.constant 0 : index
    %49 = vector.load %arg3[%c1, %c0_17, %c0_18] : memref<2x8x24xf32, #tpu.memory_space<vmem>>, vector<1x8x24xf32>
    %50 = vector.shape_cast %49 : vector<1x8x24xf32> to vector<8x24xf32>
    %c1_i32_19 = arith.constant 1 : i32
    %51 = tpu.dynamic_rotate %48 by %c1_i32_19 dim 1 : vector<8x128xf32>, i32 -> vector<8x128xf32>
    %cst_20 = arith.constant 0.000000e+00 : f32
    %52 = vector.shape_cast %22 : vector<1x128xi1> to vector<1x128xi1>
    %53 = vector.broadcast %52 : vector<1x128xi1> to vector<8x128xi1>
    %54 = vector.broadcast %cst_20 : f32 to vector<8x128xf32>
    %55 = arith.select %53, %51, %54 : vector<8x128xi1>, vector<8x128xf32>
    %c127_i32_21 = arith.constant 127 : i32
    %56 = tpu.dynamic_rotate %48 by %c127_i32_21 dim 1 : vector<8x128xf32>, i32 -> vector<8x128xf32>
    %cst_22 = arith.constant 0.000000e+00 : f32
    %57 = vector.shape_cast %24 : vector<1x128xi1> to vector<1x128xi1>
    %58 = vector.broadcast %57 : vector<1x128xi1> to vector<8x128xi1>
    %59 = vector.broadcast %cst_22 : f32 to vector<8x128xf32>
    %60 = arith.select %58, %56, %59 : vector<8x128xi1>, vector<8x128xf32>
    %61 = tpu.concatenate %55, %48, %60 in 0 : vector<8x128xf32>, vector<8x128xf32>, vector<8x128xf32> -> vector<24x128xf32>
    %cst_23 = arith.constant dense<0.000000e+00> : vector<8x128xf32>
    %62 = tpu.matmul %50, %61, %cst_23 {dimension_numbers = #tpu.dot_dimension_numbers<[1], [0], [0], [1], [0, 0, 1, 1], [], []>} : vector<8x24xf32>, vector<24x128xf32>, vector<8x128xf32> -> vector<8x128xf32>
    %63 = arith.addf %62, %3 : vector<8x128xf32>
    %cst_24 = arith.constant 0.000000e+00 : f32
    %64 = vector.broadcast %cst_24 : f32 to vector<8x128xf32>
    %65 = arith.cmpf ogt, %63, %64 : vector<8x128xf32>
    %66 = math.exp %63 : vector<8x128xf32>
    %cst_25 = arith.constant 1.000000e+00 : f32
    %67 = vector.broadcast %cst_25 : f32 to vector<8x128xf32>
    %68 = arith.subf %66, %67 : vector<8x128xf32>
    %cst_26 = arith.constant 1.67326319 : f32
    %69 = vector.broadcast %cst_26 : f32 to vector<8x128xf32>
    %70 = arith.mulf %69, %68 : vector<8x128xf32>
    %71 = arith.select %65, %63, %70 : vector<8x128xi1>, vector<8x128xf32>
    %cst_27 = arith.constant 1.05070102 : f32
    %72 = vector.broadcast %cst_27 : f32 to vector<8x128xf32>
    %73 = arith.mulf %72, %71 : vector<8x128xf32>
    %c0_28 = arith.constant 0 : index
    %c0_29 = arith.constant 0 : index
    %74 = vector.load %arg5[%c0_28, %c0_29] : memref<8x128xf32, #tpu.memory_space<vmem>>, vector<8x128xf32>
    tpu.vector_store %arg5[%c0_28, %c0_29], %73 {strides = array<i32>} : memref<8x128xf32, #tpu.memory_space<vmem>>, vector<8x128xf32>,
    %c2_i32 = arith.constant 2 : i32
    %75 = arith.cmpi eq, %arg1, %c2_i32 : i32
    %76 = arith.extui %75 : i1 to i32
    %c0_i32_30 = arith.constant 0 : i32
    %77 = arith.cmpi ne, %76, %c0_i32_30 : i32
    scf.if %77 {
      %c0_31 = arith.constant 0 : index
      %c0_32 = arith.constant 0 : index
      %78 = vector.load %arg4[%c0_31, %c0_32] : memref<8x128xf32, #tpu.memory_space<vmem>>, vector<8x128xf32>
      tpu.vector_store %arg4[%c0_31, %c0_32], %73 {strides = array<i32>} : memref<8x128xf32, #tpu.memory_space<vmem>>, vector<8x128xf32>,
    } else {
    }
    return
  }
  func.func @transform_0(%arg0: i32, %arg1: i32) -> (i32, i32) {
    %c0_i32 = arith.constant 0 : i32
    %c0_i32_0 = arith.constant 0 : i32
    return %c0_i32, %arg0 : i32, i32
  }
  func.func @transform_1(%arg0: i32, %arg1: i32) -> (i32, i32, i32) {
    %c0_i32 = arith.constant 0 : i32
    %c0_i32_0 = arith.constant 0 : i32
    %c0_i32_1 = arith.constant 0 : i32
    return %arg1, %c0_i32, %c0_i32_0 : i32, i32, i32
  }
  func.func @transform_2(%arg0: i32, %arg1: i32) -> (i32, i32) {
    %c0_i32 = arith.constant 0 : i32
    %c0_i32_0 = arith.constant 0 : i32
    return %c0_i32, %arg0 : i32, i32
  }
}

</mosaic_0001>

<bundles_post_ra>
// kernel: tpu_custom_call.1
= control target key start
LH: loop header
LB: loop body
LE: loop exit
PB: predicated region body
PF: predicated region fallthrough
CT: control target
= control target key end

     0   :  { %7 = vsyncpa [#allocation4], 0  ;;  %s1020_s0 = inlined_call_operand.hbm [shape: f32[8,128], index: 0, kind: input, shape index: {}]   ;;  %s1021_s1 = inlined_call_operand.hbm [shape: f32[6,8,24], index: 1, kind: input, shape index: {}]   ;;  %s1022_s2 = inlined_call_operand.hbm [shape: f32[8,128], index: 2, kind: output, shape index: {}]  }
   0x1   :  { %8 = vsyncpa [#allocation7], 0 }
   0x2   :  { %10 = vsyncpa [#allocation7 + $0x1], 0 }
   0x3   :  { %11 = vsyncpa [#allocation5], 0  ;;  %s796_s9 = smov 0   ;;  %s798_s10 = smov 0  }
   0x4   :  { %s800_s11 = smov 0   ;;  %s802_s12 = smov 0  }
   0x5   :  { %s804_s13 = smov 0   ;;  %s806_s14 = smov 0  }
   0x6 LB: > { %s481_s15 = sadd.s32 4294967295, %s768_s14   ;;  %s62_s16 = sadd.s32 1, %s756_s11  ;;  %s768_s14 = sphi %s806_s14, %s17_s14   ;;  %s764_s13 = sphi %s804_s13, %s1047_s13   ;;  %s760_s12 = sphi %s802_s12, %s1046_s12   ;;  %s756_s11 = sphi %s800_s11, %s1045_s11   ;;  %s752_s10 = sphi %s798_s10, %s1044_s10   ;;  %s748_s9 = sphi %s796_s9, %s1043_s9  }
   0x7   : > { %p69_p0 = scmp.ne.s32.totalorder %s756_s11, %s752_s10  ;;  %p70_p1 = scmp.eq.s32.totalorder %s768_s14, 0 }
   0x8   : > { %p75_p2 = scmp.ne.s32.totalorder %s752_s10, %s748_s9  ;;  %p832_p3 = scmp.eq.s32.totalorder %s481_s15, 0 }
   0x9   : > { %p71_p4 = por %p70_p1, %p69_p0  ;;  %p482_p5 = scmp.ge.s32.totalorder %s768_s14, 1 }
   0xa   : > { %s1028_s17 = scalar_select %p832_p3, 1, 0 }
   0xb   : > { %p839_p6 = por %p832_p3, %p75_p2  ;;  %p112_p7 = scmp.lt.s32.totalorder %s768_s14, 4 }
   0xc   : > { %s770_s20 = smov [#allocation3]   ;;  %p560_p10 = scmp.lt.s32.totalorder %s768_s14, 3 }
   0xd   : > { %s1029_s18 = scalar_select %p839_p6, 1, 0 }
   0xe   : > { %p844_p8 = pnand %p482_p5, %p112_p7  ;;  %s127_s21 = sshll.u32 %s770_s20, 4  ;;  %s128_s21 = int_to_ptr.vmem [resolvable:$true] %s127_s21 }
   0xf   : > { %s138_s22 = sand.u32 1, %s756_s11   ;;  %p858_p12 = pnand %p560_p10, %p71_p4 }
  0x10   : > { %s1030_s19 = scalar_select %p844_p8, 1, 0 }
  0x11   : > { %p551_p9 = pneg %p844_p8  ;;  %s626_s27 = scalar_lea.hbm %s1020_s0, 128 }
  0x12   : > { %s1032_s24 = scalar_select %p858_p12, 1, 0 }
  0x13   : > { %p854_p11 = pnand %p551_p9, %p832_p3  ;;  %p627_p13 = scmp.ne.s32.totalorder %s1020_s0, %s626_s27 }
  0x14   : > { %p633_p5 = scmp.lt.u32.totalorder %s626_s27, %s1020_s0 }
  0x15   : > { %p628_p0 = pneg %p854_p11 }
  0x17   : > { %p629_p1 = pnand %p628_p0, %p627_p13 }
  0x19   : > { %p630_p2 = pneg %p629_p1 }
  0x1b   : > { %p635_p4 = pnand %p633_p5, %p630_p2 }
  0x1d   : > { %638 = shalt.err (!%p635_p4)
}
  0x1e   : > { %s639_s4 = scalar_lea.vmem %s128_s21, 128  ;;  %p647_p6 = scmp.lt.s32.totalorder %s128_s21, %s128_s21 }
  0x1f   : > { %p640_p7 = scmp.ne.s32.totalorder %s128_s21, %s639_s4  ;;  %p648_p3 = scmp.lt.s32.totalorder %s639_s4, %s639_s4 }
  0x21   : > { %p642_p9 = pnand %p640_p7, %p628_p0  ;;  %p649_p8 = por %p648_p3, %p647_p6 }
  0x23   : > { %p643_p10 = pneg %p642_p9 }
  0x25   : > { %p650_p12 = pnand %p649_p8, %p643_p10 }
  0x27   : > { %653 = shalt.err (!%p650_p12)
}
  0x28   : > { %554 = dma.hbm_to_vmem [thread:$0]  (!%p854_p11), %s1020_s0, 128, %s128_s21, [#allocation4]  }
  0x29   : > { %s26_s7 = sadd.s32 1, %s764_s13  ;;  %s485_s8 = sshll.u32 %s138_s22, 4 }
  0x2a   : > { %p27_p13 = scmp.ge.s32.totalorder %s26_s7, 3  ;;  %s506_s9 = sshll.u32 %s764_s13, 8 }
  0x2b   : > { %s142_s20 = scalar_lea.vmem [#allocation6], %s485_s8  ;;  %s887_s27 = scalar_lea.hbm %s1021_s1, %s506_s9 }
  0x2c   : > { %s149_s25 = sshll.u32 %s142_s20, 4  ;;  %s1049_s7 = smov (%p27_p13, %s26_s7), 0  ;;  %s889_s25 = int_to_ptr.vmem [resolvable:$true] %s149_s25 }
  0x2d   : > { %s59_s21 = ssub.s32 %s764_s13, %s1049_s7  ;;  %s899_s29 = scalar_lea.sflag [#allocation7], %s138_s22 }
  0x2e   : > { %p893_p3 = scmp.eq.s32.totalorder %s59_s21, 0  ;;  %s654_s30 = scalar_lea.hbm %s887_s27, 256 }
  0x2f   : > { %p655_p6 = scmp.ne.s32.totalorder %s887_s27, %s654_s30  ;;  %p1034_p8 = scmp.ne.s32.totalorder %s1032_s24, 0 }
  0x30   : > { %s659_s5 = scalar_lea.hbm %s1021_s1, 768  ;;  %p660_p1 = scmp.lt.u32.totalorder %s887_s27, %s1021_s1 }
  0x31   : > { %p656_p11 = pneg %p1034_p8  ;;  %p661_p2 = scmp.lt.u32.totalorder %s659_s5, %s654_s30 }
  0x32   : > { %p663_p4 = scmp.lt.u32.totalorder %s654_s30, %s887_s27 }
  0x33   : > { %p657_p12 = pnand %p656_p11, %p655_p6  ;;  %p662_p5 = por %p661_p2, %p660_p1 }
  0x35   : > { %p658_p0 = pneg %p657_p12  ;;  %p664_p7 = por %p663_p4, %p662_p5 }
  0x37   : > { %p665_p9 = pnand %p664_p7, %p658_p0 }
  0x39   : > { %668 = shalt.err (!%p665_p9)
}
  0x3a   : > { %s669_s22 = scalar_lea.vmem %s889_s25, 256  ;;  %s771_s9 = smov [#allocation6]  }
  0x3b   : > { %p670_p10 = scmp.ne.s32.totalorder %s889_s25, %s669_s22  ;;  %s674_s20 = sshll.u32 %s771_s9, 4  ;;  %s675_s20 = int_to_ptr.vmem [resolvable:$false] %s674_s20 }
  0x3c   : > { %s676_s23 = scalar_lea.vmem %s675_s20, 512  ;;  %p677_p12 = scmp.lt.s32.totalorder %s889_s25, %s675_s20 }
  0x3d   : > { %p672_p13 = pnand %p670_p10, %p656_p11  ;;  %p678_p1 = scmp.lt.s32.totalorder %s676_s23, %s669_s22 }
  0x3f   : > { %p673_p6 = pneg %p672_p13  ;;  %p679_p2 = por %p678_p1, %p677_p12 }
  0x41   : > { %p680_p5 = pnand %p679_p2, %p673_p6 }
  0x43   : > { %683 = shalt.err (!%p680_p5)
}
  0x44   : > { %s772_s26 = smov 128   ;;  %s773_s21 = smov 8  }
  0x45   : > { %558 = dma.hbm_to_vmem [thread:$0]  (!%p1034_p8), %s887_s27, 256, %s889_s25, %s899_s29, %s772_s26, %s772_s26, %s773_s21  }
  0x46   : > { %s932_s30 = scalar_select %p893_p3, %s756_s11, %s62_s16  }
  0x47   : > { %p1035_p11 = scmp.ne.s32.totalorder %s1030_s19, 0 }
  0x48   : > { %p1036_p0 = scmp.ne.s32.totalorder (!%p1035_p11), %s1028_s17, 0 }
  0x49   : > { %161 = sbr.rel (%p1035_p11) target bundleno = 831 (0x33f), region = 28 }
  0x50   : > { %735 = dma.done.wait (%p1036_p0), [#allocation4], 128  }
  0x51   : > { %737 = vsyncadd (%p1036_p0), [#allocation4], 4294967168  ;;  %s167_s3 = sand.u32 1, %s752_s10   ;;  %p1037_p8 = scmp.ne.s32.totalorder %s1029_s18, 0 }
  0x52   : > { %s941_s4 = sshll.u32 %s167_s3, 4  ;;  %s168_s24 = scalar_lea.sflag [#allocation7], %s167_s3 }
  0x53   : > { %s171_s25 = scalar_lea.vmem [#allocation6], %s941_s4 }
  0x54   : > { %739 = dma.done.wait (%p1037_p8), %s168_s24, 256  }
  0x55   : > { %741 = vsyncadd (%p1037_p8), %s168_s24, 4294967040  ;;  %p491_p3 = scmp.ne.s32.totalorder %s760_s12, 0 }
  0x56   : > { %v192_v0 = vld [vmem:[#allocation3] sm:$0xff] (!%p491_p3) }
  0x57   : > { %191 = sbr.rel (%p491_p3) target bundleno = 94 (0x5e), region = 40  ;;  %193 = vst [vmem:[#allocation2] sm:$0xff] (!%p491_p3), %v192_v0 }
  0x5e PF: > { %v194_v1 = vld [vmem:[#allocation2] sm:$0xff]  ;;  %s774_s16 = smov 1   ;;  %v775_v2 = vmov 0.0|0.0   ;;  %vm776_vm0 = vmmov 0   ;;  %v777_v3 = vmov 0.0   ;;  %s778_s17 = smov 127   ;;  %v195_v4 = vlaneseq }
  0x5f   : > { %212 = vrot.lane.b32.xlu0 %v194_v1, %s774_s16  ;;  %533 = vmatprep.subr.bf16.mxu0 %v775_v2  ;;  %vm779_vm2 = vmmov 1   ;;  %v211_v12 = vld [vmem:[%s171_s25] sm:$0xff]  ;;  %vm222_vm5 = vcmask 195584   ;;  %v496_v23 = vld [vmem:[%s171_s25 + $0x8] sm:$0xff]  ;;  %p501_p4 = scmp.ne.s32.totalorder %s760_s12, 2 }
  0x60   : > { %521 = vmatprep.mubr.msk.f32.mxu0 %vm776_vm0, %v777_v3  ;;  %537 = vmatprep.subr.bf16.mxu1 %v775_v2  ;;  %v196_v5 = vand.u32 127, %v195_v4 }
  0x61   : > { %530 = vmatprep.mubr.msk.f32.mxu1 %vm776_vm0, %v777_v3 }
  0x62   : > { %v201_v6 = vand.u32 63, %v196_v5 }
  0x63   : > { %217 = vrot.lane.b32.xlu0 %v194_v1, %s778_s17 }
  0x64   : > { %vm209_vm1 = vcmp.ne.s32.totalorder %v201_v6, 0  ;;  %vm956_vm4 = vcmp.ne.s32.totalorder %v201_v6, 63 }
  0x65   : > { %vm950_vm3 = vmpackc.low %vm779_vm2, %vm209_vm1 }
  0xd1   : > { %v213_v7 = vpop.permute.xlu0 %212 }
  0xd2   : > { %v534_v9 = vpack.c.bf16 %v194_v1, %v213_v7 }
  0xd4   : > { %536 = vmatpush3.bf16.msk.msra.mxu0 %vm950_vm3, %v534_v9 }
  0xd5   : > { %519 = vmatprep.subr.mxu0 %v777_v3  ;;  %v218_v10 = vpop.permute.xlu0 %217 }
  0xd8   : > { %520 = vmatpush3.msk.msra.mxu0 %vm956_vm4, %v218_v10 }
  0xd9   : > { %522 = vmatmul.mubr.msk.f32.vlgmr.msra.gmra.mrb[0].mxu0 %vm222_vm5, %v211_v12 }
 0x1ac   : > { %v292_v13 = vpop.f32.mrb[0].mxu0 }
 0x1ad   : > { %v297_v14 = vmul.f32 1.442695, %v292_v13  ;;  %v523_v15 = vpop.f32.mrb[1].mxu0  ;;  %vm296_vm6 = vcmp.gt.f32.partialorder %v292_v13, 0.0 }
 0x1af   : > { %622 = vpow2.f32 %v297_v14 }
 0x1b9   : > { %v623_v16 = vpop.eup %622 }
 0x1ba   : > { %v495_v17 = vadd.f32 -1.0, %v623_v16 }
 0x1bc   : > { %v300_v18 = vmul.f32 1.6732632, %v495_v17 }
 0x1be   : > { %v301_v19 = vsel %vm296_vm6, %v292_v13, %v300_v18 }
 0x1bf   : > { %v302_v20 = vmul.f32 1.050701, %v301_v19 }
 0x1c1   : > { %305 = vrot.lane.b32.xlu1 %v302_v20, %s774_s16 }
 0x1c5   : > { %308 = vrot.lane.b32.xlu1 %v302_v20, %s778_s17 }
 0x233   : > { %v306_v21 = vpop.permute.xlu1 %305 }
 0x234   : > { %v538_v22 = vpack.c.bf16 %v302_v20, %v306_v21 }
 0x236   : > { %540 = vmatpush3.bf16.msk.msra.mxu1 %vm950_vm3, %v538_v22 }
 0x237   : > { %528 = vmatprep.subr.mxu1 %v777_v3  ;;  %v309_v24 = vpop.permute.xlu1 %308 }
 0x23a   : > { %529 = vmatpush3.msk.msra.mxu1 %vm956_vm4, %v309_v24 }
 0x23b   : > { %531 = vmatmul.mubr.msk.f32.vlgmr.msra.gmra.mrb[0].mxu1 %vm222_vm5, %v496_v23 }
 0x30e   : > { %v380_v25 = vpop.f32.mrb[0].mxu1 }
 0x30f   : > { %v381_v26 = vadd.f32 %v380_v25, %v194_v1  ;;  %v532_v27 = vpop.f32.mrb[1].mxu1 }
 0x311   : > { %v385_v28 = vmul.f32 1.442695, %v381_v26  ;;  %vm384_vm7 = vcmp.gt.f32.partialorder %v381_v26, 0.0 }
 0x313   : > { %624 = vpow2.f32 %v385_v28 }
 0x31d   : > { %v625_v29 = vpop.eup %624 }
 0x31e   : > { %v500_v30 = vadd.f32 -1.0, %v625_v29 }
 0x31f   : > { %395 = sbr.rel (%p501_p4) target bundleno = 806 (0x326), region = 44 }
 0x320   : > { %v388_v31 = vmul.f32 1.6732632, %v500_v30 }
 0x322   : > { %v389_v32 = vsel %vm384_vm7, %v381_v26, %v388_v31 }
 0x323   : > { %v390_v33 = vmul.f32 1.050701, %v389_v32 }
 0x325   : > { %391 = vst [vmem:[#allocation2] sm:$0xff] %v390_v33  ;;  %396 = vst [vmem:[#allocation8] sm:$0xff] (!%p501_p4), %v390_v33 }
 0x326 PF: > { %p976_p7 = scmp.eq.s32.totalorder %s481_s15, 2  ;;  %s780_s19 = smov [#allocation8]  }
 0x327   : > { %s406_s27 = sshll.u32 %s780_s19, 4  ;;  %s407_s27 = int_to_ptr.vmem [resolvable:$true] %s406_s27 }
 0x328   : > { %s684_s28 = scalar_lea.vmem %s407_s27, 128  ;;  %p691_p6 = scmp.lt.s32.totalorder %s407_s27, %s407_s27 }
 0x329   : > { %p685_p9 = scmp.ne.s32.totalorder %s407_s27, %s684_s28  ;;  %p692_p12 = scmp.lt.s32.totalorder %s684_s28, %s684_s28 }
 0x32b   : > { %p686_p10 = pnand %p685_p9, %p976_p7  ;;  %p693_p1 = por %p692_p12, %p691_p6 }
 0x32d   : > { %p687_p13 = pneg %p686_p10 }
 0x32f   : > { %p694_p2 = pnand %p693_p1, %p687_p13 }
 0x331   : > { %697 = shalt.err (!%p694_p2)
}
 0x332   : > { %s698_s15 = scalar_lea.hbm %s1022_s2, 128 }
 0x333   : > { %p699_p5 = scmp.ne.s32.totalorder %s1022_s2, %s698_s15  ;;  %p704_p8 = scmp.lt.u32.totalorder %s698_s15, %s1022_s2 }
 0x335   : > { %p700_p11 = pnand %p699_p5, %p976_p7 }
 0x337   : > { %p701_p0 = pneg %p700_p11 }
 0x339   : > { %p706_p3 = pnand %p704_p8, %p701_p0 }
 0x33b   : > { %709 = shalt.err (!%p706_p3)
}
 0x33c   : > { %548 = dma.vmem_to_hbm [thread:$0]  (%p976_p7), %s407_s27, 128, %s1022_s2, [#allocation5]  }
 0x33d   : > { %743 = dma.done.wait (%p976_p7), [#allocation5], 128  }
 0x33e   : > { %745 = vsyncadd (%p976_p7), [#allocation5], 4294967168 }
 0x33f PF: > { %s17_s14 = sadd.s32 1, %s768_s14   ;;  %s1043_s9 = smov %s752_s10 }
 0x340   : > { %p14_p4 = scmp.ge.s32.totalorder %s17_s14, 5   ;;  %s1044_s10 = smov %s756_s11 }
 0x341   : > { %s1045_s11 = smov %s932_s30  ;;  %s1046_s12 = smov %s764_s13 }
 0x342   : > { %s1047_s13 = smov %s1049_s7  ;;  %16 = sbr.rel (!%p14_p4) target bundleno = 6 (0x6), region = 81 }
 0x349   :  { %419 = vsyncpa [#allocation4], 1 }
 0x34a   :  { %421 = vsyncpa [#allocation4 + $0x1], 1 }
 0x34b   :  { %422 = vsyncpa [#allocation7], 1 }
 0x34c   :  { %424 = vsyncpa [#allocation7 + $0x1], 1 }
 0x34d   :  { %425 = vsyncpa [#allocation5], 1 }
 0x34e   :  { %427 = vsyncpa [#allocation5 + $0x1], 1 }

</bundles_post_ra>
